<compile_context>
chip_gen: v5e
topology: v5e:2x2
jax: 0.10.0
libtpu: 0.0.40
codegen_flags: <defaults>
</compile_context>

<pallas_src>
import jax
import jax.numpy as jnp
from jax.experimental import pallas as pl
from jax.experimental.pallas import tpu as pltpu


def _mm(a, b, dims):
    """bf16 MXU matmul with f32 accumulation."""
    return jax.lax.dot_general(
        a.astype(jnp.bfloat16), b.astype(jnp.bfloat16), dims,
        preferred_element_type=jnp.float32)


def atten_block_kernel(xt_ref, xf_ref, w123_ref, b123_ref, w4_ref, b4_ref,
                       o_ref):
    C4 = w4_ref.shape[1]

    x_tile = xt_ref[0]          # (C, TQ)  f32 -- residual stays exact f32
    x_full = xf_ref[0]          # (C, HW)  f32

    w123 = w123_ref[...]        # (3*C4, C)
    b123 = b123_ref[...]        # (3*C4, 1)

    # Fused 1x1 convs (per-pixel matmuls over channels).
    # theta is only needed for this query tile; phi/g need the full image.
    theta = _mm(w123[:C4], x_tile, (((1,), (0,)), ((), ()))) + b123[:C4]   # (C4, TQ)
    pg    = _mm(w123[C4:], x_full, (((1,), (0,)), ((), ()))) + b123[C4:]   # (2*C4, HW)
    phi = pg[:C4]               # (C4, HW)
    g   = pg[C4:]               # (C4, HW)

    # attn[i, j] = sum_c theta[c, i] * phi[c, j]      -> (TQ, HW)
    attn = _mm(theta, phi, (((0,), (0,)), ((), ())))

    # Exact row softmax (full kv row resident); f32 elementwise math.
    m = jnp.max(attn, axis=-1, keepdims=True)
    e = jnp.exp(attn - m)
    l = jnp.sum(e, axis=-1, keepdims=True)
    p = e * pl.reciprocal(l, approx=True)

    # y[i, c] = sum_j p[i, j] * g[c, j]               -> (TQ, C4)
    y = _mm(p, g, (((1,), (1,)), ((), ())))

    # out[c, i] = sum_k w4[c, k] * y[i, k]            -> (C, TQ)
    out = _mm(w4_ref[...], y, (((1,), (1,)), ((), ())))

    o_ref[0] = x_tile + out + b4_ref[...]


def _pick_q_tile(HW):
    # Largest lane-aligned query tile that still yields >= 2 tiles
    # (keeps the (TQ, HW) attention slab small and feeds both v7x cores).
    for t in (512, 256, 128):
        if HW % t == 0 and HW // t >= 2:
            return t
    return HW


def atten_block(x_nchw, params):
    """x_nchw: (B, C, H, W) float32.
    params: torch-style conv weights w1..w3 (C/4, C), w4 (C, C/4),
    biases b1..b3 (C/4,), b4 (C,)."""
    B, C, H, W = x_nchw.shape
    HW = H * W
    C4 = C // 4

    # NCHW -> (B, C, HW): a free reshape, no transpose / extra HBM traffic.
    x = x_nchw.reshape(B, C, HW).astype(jnp.float32)

    # Pack the three projection convs into one weight / bias.
    w123 = jnp.concatenate([params["w1"], params["w2"], params["w3"]], axis=0)  # (3*C4, C)
    b123 = jnp.concatenate([params["b1"], params["b2"], params["b3"]],
                           axis=0).reshape(3 * C4, 1)                           # (3*C4, 1)
    w4 = params["w4"]                                                           # (C, C4)
    b4 = params["b4"].reshape(C, 1)                                             # (C, 1)

    TQ = _pick_q_tile(HW)
    n_qt = HW // TQ

    full = lambda shape: pl.BlockSpec(shape, lambda b, q: (0,) * len(shape))

    out = pl.pallas_call(
        atten_block_kernel,
        out_shape=jax.ShapeDtypeStruct((B, C, HW), jnp.float32),
        grid_spec=pltpu.PrefetchScalarGridSpec(
            num_scalar_prefetch=0,
            grid=(B, n_qt),                       # q innermost -> x_full block
            in_specs=[                            # re-DMA'd only when b changes
                pl.BlockSpec((1, C, TQ), lambda b, q: (b, 0, q)),   # x (query tile)
                pl.BlockSpec((1, C, HW), lambda b, q: (b, 0, 0)),   # x (full, for phi/g)
                full((3 * C4, C)), full((3 * C4, 1)),               # packed conv1..3
                full((C, C4)), full((C, 1)),                        # conv4
            ],
            out_specs=pl.BlockSpec((1, C, TQ), lambda b, q: (b, 0, q)),
        ),
        input_output_aliases={0: 0},              # out = x + delta, reuse x buffer
        compiler_params=pltpu.CompilerParams(
            dimension_semantics=("parallel", "parallel"),
            # Raised above the default scoped limit (16/32 MiB) so larger query
            # tiles fit on v5e/v6e; still leaves headroom under v7x's 64 MiB.
            vmem_limit_bytes=48 * 1024 * 1024,
        ),
    )(x, x, w123, b123, w4, b4)

    return out.reshape(B, C, H, W)


def make_params(key, channel):
    """Deterministic params in torch conv orientation: w (Cout, Cin), b (Cout,)."""
    C, C4 = channel, channel // 4
    keys = jax.random.split(key, 8)

    def conv_init(kw, kb, cin, cout):
        bound = float(cin) ** -0.5  # matches PyTorch default 1x1-conv init range
        w = jax.random.uniform(kw, (cout, cin), jnp.float32, -bound, bound)
        b = jax.random.uniform(kb, (cout,), jnp.float32, -bound, bound)
        return w, b

    w1, b1 = conv_init(keys[0], keys[1], C, C4)
    w2, b2 = conv_init(keys[2], keys[3], C, C4)
    w3, b3 = conv_init(keys[4], keys[5], C, C4)
    w4, b4 = conv_init(keys[6], keys[7], C4, C)
    return dict(w1=w1, b1=b1, w2=w2, b2=b2, w3=w3, b3=b3, w4=w4, b4=b4)


def atten_block_ref(x_nchw, params):
    """Pure-JAX f32 reference mirroring the torch forward exactly."""
    B, C, H, W = x_nchw.shape
    HW = H * W

    def conv(x, w, b):  # w (Cout, Cin), b (Cout,)
        return jnp.einsum("bchw,dc->bdhw", x, w) + b.reshape(1, -1, 1, 1)

    theta = conv(x_nchw, params["w1"], params["b1"]).reshape(B, C // 4, HW)
    phi = conv(x_nchw, params["w2"], params["b2"]).reshape(B, C // 4, HW)
    g = conv(x_nchw, params["w3"], params["b3"]).reshape(B, C // 4, HW)
    attn = jnp.einsum("bci,bcj->bij", theta, phi)
    attn = jax.nn.softmax(attn, axis=-1)
    attn_g = jnp.einsum("bcj,bij->bci", g, attn).reshape(B, C // 4, H, W)
    out = conv(attn_g, params["w4"], params["b4"])
    return x_nchw + out


if __name__ == "__main__":
    B, C, H, W = 2, 8, 16, 16
    key = jax.random.PRNGKey(0)
    kx, kp = jax.random.split(key)
    x = jax.random.normal(kx, (B, C, H, W), jnp.float32)
    params = make_params(kp, C)

    y = atten_block(x, params)
    y = jax.block_until_ready(y)

    y_ref = atten_block_ref(x, params)
    assert y.shape == (B, C, H, W)
    # bf16 MXU operands + approx reciprocal -> slightly looser tolerance vs f32 ref.
    assert jnp.allclose(y, y_ref, rtol=3e-2, atol=3e-2), "mismatch vs reference"

    print("KERNEL_OK")
</pallas_src>

<mosaic_0001>
module attributes {stable_mosaic.version = 11 : i64} {
  func.func @atten_block_kernel(%arg0: i32, %arg1: i32, %arg2: memref<1x8x128xf32, #tpu.memory_space<vmem>>, %arg3: memref<1x8x256xf32, #tpu.memory_space<vmem>>, %arg4: memref<6x8xf32, #tpu.memory_space<vmem>>, %arg5: memref<6x1xf32, #tpu.memory_space<vmem>>, %arg6: memref<8x2xf32, #tpu.memory_space<vmem>>, %arg7: memref<8x1xf32, #tpu.memory_space<vmem>>, %arg8: memref<1x8x128xf32, #tpu.memory_space<vmem>>) attributes {dimension_semantics = [#tpu.dimension_semantics<parallel>, #tpu.dimension_semantics<parallel>], iteration_bounds = array<i64: 2, 2>, scalar_prefetch = 0 : i64, scratch_operands = 0 : i64, tpu.core_type = #tpu.core_type<tc>, window_params = [{transform_indices = @transform_0, window_bounds = array<i64: 1, 8, 128>}, {transform_indices = @transform_1, window_bounds = array<i64: 1, 8, 256>}, {pipeline_mode = #tpu.pipeline_mode<synchronous>, transform_indices = @transform_2, window_bounds = array<i64: 6, 8>}, {pipeline_mode = #tpu.pipeline_mode<synchronous>, transform_indices = @transform_3, window_bounds = array<i64: 6, 1>}, {pipeline_mode = #tpu.pipeline_mode<synchronous>, transform_indices = @transform_4, window_bounds = array<i64: 8, 2>}, {pipeline_mode = #tpu.pipeline_mode<synchronous>, transform_indices = @transform_5, window_bounds = array<i64: 8, 1>}, {transform_indices = @transform_6, window_bounds = array<i64: 1, 8, 128>}]} {
    %c0 = arith.constant 0 : index
    %c0_0 = arith.constant 0 : index
    %c0_1 = arith.constant 0 : index
    %0 = vector.load %arg2[%c0, %c0_0, %c0_1] : memref<1x8x128xf32, #tpu.memory_space<vmem>>, vector<1x8x128xf32>
    %1 = vector.shape_cast %0 : vector<1x8x128xf32> to vector<8x128xf32>
    %c0_2 = arith.constant 0 : index
    %c0_3 = arith.constant 0 : index
    %c0_4 = arith.constant 0 : index
    %2 = vector.load %arg3[%c0_2, %c0_3, %c0_4] : memref<1x8x256xf32, #tpu.memory_space<vmem>>, vector<1x8x256xf32>
    %3 = vector.shape_cast %2 : vector<1x8x256xf32> to vector<8x256xf32>
    %c0_5 = arith.constant 0 : index
    %c0_6 = arith.constant 0 : index
    %4 = vector.load %arg4[%c0_5, %c0_6] : memref<6x8xf32, #tpu.memory_space<vmem>>, vector<6x8xf32>
    %c0_7 = arith.constant 0 : index
    %c0_8 = arith.constant 0 : index
    %5 = vector.load %arg5[%c0_7, %c0_8] : memref<6x1xf32, #tpu.memory_space<vmem>>, vector<6x1xf32>
    %6 = vector.extract_strided_slice %4 {offsets = [0, 0], sizes = [2, 8], strides = [1, 1]} : vector<6x8xf32> to vector<2x8xf32>
    %7 = arith.truncf %6 : vector<2x8xf32> to vector<2x8xbf16>
    %8 = arith.truncf %1 : vector<8x128xf32> to vector<8x128xbf16>
    %cst = arith.constant dense<0.000000e+00> : vector<2x128xf32>
    %9 = tpu.matmul %7, %8, %cst {dimension_numbers = #tpu.dot_dimension_numbers<[1], [0], [0], [1], [0, 0, 1, 1], [], []>} : vector<2x8xbf16>, vector<8x128xbf16>, vector<2x128xf32> -> vector<2x128xf32>
    %10 = vector.extract_strided_slice %5 {offsets = [0, 0], sizes = [2, 1], strides = [1, 1]} : vector<6x1xf32> to vector<2x1xf32>
    %11 = vector.broadcast %10 : vector<2x1xf32> to vector<2x128xf32>
    %12 = arith.addf %9, %11 : vector<2x128xf32>
    %13 = vector.extract_strided_slice %4 {offsets = [2, 0], sizes = [4, 8], strides = [1, 1]} : vector<6x8xf32> to vector<4x8xf32>
    %14 = arith.truncf %13 : vector<4x8xf32> to vector<4x8xbf16>
    %15 = arith.truncf %3 : vector<8x256xf32> to vector<8x256xbf16>
    %cst_9 = arith.constant dense<0.000000e+00> : vector<4x256xf32>
    %16 = tpu.matmul %14, %15, %cst_9 {dimension_numbers = #tpu.dot_dimension_numbers<[1], [0], [0], [1], [0, 0, 1, 1], [], []>} : vector<4x8xbf16>, vector<8x256xbf16>, vector<4x256xf32> -> vector<4x256xf32>
    %17 = vector.extract_strided_slice %5 {offsets = [2, 0], sizes = [4, 1], strides = [1, 1]} : vector<6x1xf32> to vector<4x1xf32>
    %18 = vector.broadcast %17 : vector<4x1xf32> to vector<4x256xf32>
    %19 = arith.addf %16, %18 : vector<4x256xf32>
    %20 = vector.extract_strided_slice %19 {offsets = [0, 0], sizes = [2, 256], strides = [1, 1]} : vector<4x256xf32> to vector<2x256xf32>
    %21 = vector.extract_strided_slice %19 {offsets = [2, 0], sizes = [2, 256], strides = [1, 1]} : vector<4x256xf32> to vector<2x256xf32>
    %22 = arith.truncf %12 : vector<2x128xf32> to vector<2x128xbf16>
    %23 = arith.truncf %20 : vector<2x256xf32> to vector<2x256xbf16>
    %cst_10 = arith.constant dense<0.000000e+00> : vector<128x256xf32>
    %24 = tpu.matmul %22, %23, %cst_10 {dimension_numbers = #tpu.dot_dimension_numbers<[0], [0], [1], [1], [0, 1, 1, 1], [], []>} : vector<2x128xbf16>, vector<2x256xbf16>, vector<128x256xf32> -> vector<128x256xf32>
    %cst_11 = arith.constant dense<0xFF800000> : vector<128xf32>
    %25 = vector.multi_reduction <maximumf>, %24, %cst_11 [1] : vector<128x256xf32> to vector<128xf32>
    %26 = vector.shape_cast %25 : vector<128xf32> to vector<128x1xf32>
    %27 = vector.broadcast %26 : vector<128x1xf32> to vector<128x256xf32>
    %28 = arith.subf %24, %27 : vector<128x256xf32>
    %29 = math.exp %28 : vector<128x256xf32>
    %cst_12 = arith.constant dense<0.000000e+00> : vector<128xf32>
    %30 = vector.multi_reduction <add>, %29, %cst_12 [1] : vector<128x256xf32> to vector<128xf32>
    %31 = vector.shape_cast %30 : vector<128xf32> to vector<128x1xf32>
    %32 = tpu.reciprocal %31 {approx = true} : vector<128x1xf32> -> vector<128x1xf32>
    %33 = vector.broadcast %32 : vector<128x1xf32> to vector<128x256xf32>
    %34 = arith.mulf %29, %33 : vector<128x256xf32>
    %35 = arith.truncf %34 : vector<128x256xf32> to vector<128x256xbf16>
    %36 = arith.truncf %21 : vector<2x256xf32> to vector<2x256xbf16>
    %cst_13 = arith.constant dense<0.000000e+00> : vector<128x2xf32>
    %37 = tpu.matmul %35, %36, %cst_13 {dimension_numbers = #tpu.dot_dimension_numbers<[1], [1], [0], [0], [0, 0, 1, 0], [], []>} : vector<128x256xbf16>, vector<2x256xbf16>, vector<128x2xf32> -> vector<128x2xf32>
    %c0_14 = arith.constant 0 : index
    %c0_15 = arith.constant 0 : index
    %38 = vector.load %arg6[%c0_14, %c0_15] : memref<8x2xf32, #tpu.memory_space<vmem>>, vector<8x2xf32>
    %39 = arith.truncf %38 : vector<8x2xf32> to vector<8x2xbf16>
    %40 = arith.truncf %37 : vector<128x2xf32> to vector<128x2xbf16>
    %cst_16 = arith.constant dense<0.000000e+00> : vector<8x128xf32>
    %41 = tpu.matmul %39, %40, %cst_16 {dimension_numbers = #tpu.dot_dimension_numbers<[1], [1], [0], [0], [0, 0, 1, 0], [], []>} : vector<8x2xbf16>, vector<128x2xbf16>, vector<8x128xf32> -> vector<8x128xf32>
    %42 = arith.addf %1, %41 : vector<8x128xf32>
    %c0_17 = arith.constant 0 : index
    %c0_18 = arith.constant 0 : index
    %43 = vector.load %arg7[%c0_17, %c0_18] : memref<8x1xf32, #tpu.memory_space<vmem>>, vector<8x1xf32>
    %44 = vector.broadcast %43 : vector<8x1xf32> to vector<8x128xf32>
    %45 = arith.addf %42, %44 : vector<8x128xf32>
    %c0_19 = arith.constant 0 : index
    %c0_20 = arith.constant 0 : index
    %c0_21 = arith.constant 0 : index
    %46 = vector.load %arg8[%c0_19, %c0_20, %c0_21] : memref<1x8x128xf32, #tpu.memory_space<vmem>>, vector<1x8x128xf32>
    %47 = vector.shape_cast %46 : vector<1x8x128xf32> to vector<8x128xf32>
    %48 = vector.shape_cast %45 : vector<8x128xf32> to vector<1x8x128xf32>
    tpu.vector_store %arg8[%c0_19, %c0_20, %c0_21], %48 {strides = array<i32>} : memref<1x8x128xf32, #tpu.memory_space<vmem>>, vector<1x8x128xf32>,
    return
  }
  func.func @transform_0(%arg0: i32, %arg1: i32) -> (i32, i32, i32) {
    %c0_i32 = arith.constant 0 : i32
    %c0_i32_0 = arith.constant 0 : i32
    return %arg0, %c0_i32, %arg1 : i32, i32, i32
  }
  func.func @transform_1(%arg0: i32, %arg1: i32) -> (i32, i32, i32) {
    %c0_i32 = arith.constant 0 : i32
    %c0_i32_0 = arith.constant 0 : i32
    %c0_i32_1 = arith.constant 0 : i32
    return %arg0, %c0_i32, %c0_i32_0 : i32, i32, i32
  }
  func.func @transform_2(%arg0: i32, %arg1: i32) -> (i32, i32) {
    %c0_i32 = arith.constant 0 : i32
    %c0_i32_0 = arith.constant 0 : i32
    %c0_i32_1 = arith.constant 0 : i32
    return %c0_i32, %c0_i32_0 : i32, i32
  }
  func.func @transform_3(%arg0: i32, %arg1: i32) -> (i32, i32) {
    %c0_i32 = arith.constant 0 : i32
    %c0_i32_0 = arith.constant 0 : i32
    %c0_i32_1 = arith.constant 0 : i32
    return %c0_i32, %c0_i32_0 : i32, i32
  }
  func.func @transform_4(%arg0: i32, %arg1: i32) -> (i32, i32) {
    %c0_i32 = arith.constant 0 : i32
    %c0_i32_0 = arith.constant 0 : i32
    %c0_i32_1 = arith.constant 0 : i32
    return %c0_i32, %c0_i32_0 : i32, i32
  }
  func.func @transform_5(%arg0: i32, %arg1: i32) -> (i32, i32) {
    %c0_i32 = arith.constant 0 : i32
    %c0_i32_0 = arith.constant 0 : i32
    %c0_i32_1 = arith.constant 0 : i32
    return %c0_i32, %c0_i32_0 : i32, i32
  }
  func.func @transform_6(%arg0: i32, %arg1: i32) -> (i32, i32, i32) {
    %c0_i32 = arith.constant 0 : i32
    %c0_i32_0 = arith.constant 0 : i32
    return %arg0, %c0_i32, %arg1 : i32, i32, i32
  }
}

</mosaic_0001>

<bundles_post_ra>
// kernel: tpu_custom_call.1
= control target key start
LH: loop header
LB: loop body
LE: loop exit
PB: predicated region body
PF: predicated region fallthrough
CT: control target
= control target key end

     0   :  { %11 = vsyncpa [#allocation3], 0  ;;  %s1891_s0 = inlined_call_operand.hbm [shape: f32[2,8,256], index: 0, kind: input, shape index: {}, may-alias: {0,6}]   ;;  %s1892_s1 = inlined_call_operand.vmem [shape: f32[2,8,256], index: 1, kind: input, shape index: {}]   ;;  %s1893_s2 = inlined_call_operand.vmem [shape: f32[6,8], index: 2, kind: input, shape index: {}]   ;;  %s1894_s3 = inlined_call_operand.vmem [shape: f32[6,1], index: 3, kind: input, shape index: {}]   ;;  %s1895_s4 = inlined_call_operand.vmem [shape: f32[8,2], index: 4, kind: input, shape index: {}]   ;;  %s1896_s5 = inlined_call_operand.vmem [shape: f32[8,1], index: 5, kind: input, shape index: {}]   ;;  %s1897_s6 = inlined_call_operand.hbm [shape: f32[2,8,256], index: 6, kind: output, shape index: {}, may-alias: {0,6}]  }
   0x1   :  { %13 = vsyncpa [#allocation3 + $0x1], 0 }
   0x2   :  { %14 = vsyncpa [#allocation4], 0 }
   0x3   :  { %16 = vsyncpa [#allocation4 + $0x1], 0  ;;  %s1446_s21 = smov 0   ;;  %s1448_s22 = smov 0  }
   0x4   :  { %s1450_s23 = smov 0   ;;  %s1452_s24 = smov 0  }
   0x5   :  { %s1454_s25 = smov 0   ;;  %s1456_s26 = smov 0  }
   0x6   :  { %s1458_s27 = smov 0   ;;  %s1460_s28 = smov 0  }
   0x7 LB: > { %1902 = sst [smem:[#allocation8_spill]] %s1380_s21  ;;  %s1065_s29 = sadd.s32 4294967295, %s1408_s28   ;;  %s1408_s28 = sphi %s1460_s28, %s22_s28   ;;  %s1404_s27 = sphi %s1458_s27, %s1920_s27   ;;  %s1400_s26 = sphi %s1456_s26, %s1919_s26   ;;  %s1396_s25 = sphi %s1454_s25, %s1918_s25   ;;  %s1392_s24 = sphi %s1452_s24, %s1917_s24   ;;  %s1388_s23 = sphi %s1450_s23, %s1916_s23   ;;  %s1384_s22 = sphi %s1448_s22, %s1915_s22   ;;  %s1380_s21 = sphi %s1446_s21, %s1914_s21  }
   0x8   : > { %s1066_s30 = sadd.s32 4294967294, %s1408_s28   ;;  %s31_s7 = sadd.s32 1, %s1400_s26 }
   0x9   : > { %s34_s8 = sadd.s32 1, %s1404_s27  ;;  %p32_p0 = scmp.ge.s32.totalorder %s31_s7, 2 }
   0xa   : > { %s43_s9 = sadd.s32 1, %s1388_s23  ;;  %p50_p1 = scmp.ne.s32.totalorder %s1388_s23, %s1384_s22 }
   0xb   : > { %p51_p2 = scmp.eq.s32.totalorder %s1408_s28, 0  ;;  %s1922_s7 = smov (%p32_p0, %s31_s7), 0 }
   0xc   : > { %1903 = sst [smem:[#allocation9_spill]] %s1922_s7  ;;  %s1924_s8 = smov (!%p32_p0, %s34_s8), %s1404_s27 }
   0xd   : > { %s39_s10 = ssub.s32 %s1400_s26, %s1922_s7  ;;  %p1499_p3 = por %p51_p2, %p50_p1 }
   0xe   : > { %p36_p4 = scmp.ge.s32.totalorder %s1924_s8, 2  ;;  %p56_p5 = scmp.ne.s32.totalorder %s1384_s22, %s1380_s21 }
   0xf   : > { %p57_p6 = scmp.eq.s32.totalorder %s1065_s29, 0  ;;  %p192_p7 = scmp.eq.s32.totalorder %s1065_s29, 3 }
  0x10   : > { %s1926_s8 = smov (%p36_p4, %s1924_s8), 0  ;;  %p198_p10 = scmp.eq.s32.totalorder %s1066_s30, 3 }
  0x11   : > { %1905 = sst [smem:[#allocation10_spill]] %s1926_s8  ;;  %p1507_p8 = por %p57_p6, %p56_p5 }
  0x12   : > { %p1511_p9 = por %p192_p7, %p50_p1  ;;  %s38_s14 = ssub.s32 %s1404_s27, %s1926_s8 }
  0x13   : > { %s40_s15 = sor.u32 %s39_s10, %s38_s14  ;;  %p1517_p12 = por %p198_p10, %p56_p5 }
  0x14   : > { %p41_p11 = scmp.eq.s32.totalorder %s40_s15, 0  ;;  %p1115_p13 = scmp.lt.s32.totalorder %s1408_s28, 4 }
  0x15   : > { %s1908_s16 = scalar_select %p1517_p12, 1, 0 }
  0x16   : > { %s230_s17 = sand.u32 1, %s1388_s23   ;;  %s1070_s20 = sshll.u32 %s1404_s27, 1 }
  0x17   : > { %1909 = sst [smem:[#allocation11_spill]] %s1908_s16  ;;  %s1069_s19 = sshll.u32 %s230_s17, 3 }
  0x18   : > { %s1524_s18 = scalar_select %p41_p11, %s1388_s23, %s43_s9  }
  0x19   : > { %s238_s29 = sadd.s32 %s1400_s26, %s1070_s20  ;;  %s234_s7 = scalar_lea.vmem [#allocation2], %s1069_s19 }
  0x1a   : > { %s244_s21 = sshll.u32 %s234_s7, 4  ;;  %s1071_s8 = sshll.u32 %s238_s29, 3  ;;  %s245_s21 = int_to_ptr.vmem [resolvable:$true] %s244_s21 }
  0x1b   : > { %s240_s14 = scalar_lea.hbm %s1891_s0, %s1071_s8  ;;  %p1108_p0 = pnand %p1115_p13, %p1499_p3 }
  0x1c   : > { %s242_s15 = sshll.u32 %s240_s14, 4  ;;  %p1072_p1 = scmp.ge.s32.totalorder %s1408_s28, 1  ;;  %s243_s15 = int_to_ptr.hbm [resolvable:$true] %s242_s15 }
  0x1d   : > { %s231_s16 = scalar_lea.sflag [#allocation3], %s230_s17  ;;  %p257_p2 = scmp.lt.s32.totalorder %s1408_s28, 5 }
  0x1e   : > { %1110 = dma.hbm_to_vmem [thread:$0]  (!%p1108_p0), %s243_s15, 128, %s245_s21, %s231_s16  }
  0x1f   : > { %p258_p4 = pnand %p1072_p1, %p257_p2 }
  0x20   : > { %s1536_s9 = sand.u32 (!%p258_p4), 1, %s1384_s22  }
  0x21   : > { %261 = sbr.rel (%p258_p4) target bundleno = 1282 (0x502), region = 44  ;;  %s1073_s7 = sshll.u32 (!%p258_p4), %s1536_s9, 3 }
  0x22   : > { %s264_s19 = scalar_lea.sflag (!%p258_p4), [#allocation3], %s1536_s9  ;;  %s267_s8 = scalar_lea.vmem (!%p258_p4), [#allocation2], %s1073_s7 }
  0x26   : > { %1371 = dma.done.wait (%p1507_p8), %s264_s19, 128  }
  0x27   : > { %1373 = vsyncadd (%p1507_p8), %s264_s19, 4294967168  ;;  %p302_p3 = scmp.lt.s32.totalorder %s1396_s25, 1  ;;  %v1410_v0 = vmov 0   ;;  %v1551_v1 = vld [vmem:[%s267_s8] sm:$0xff]  ;;  %vm324_vm0 = vcmask 1043456   ;;  %vm320_vm1 = vcmask 64512  }
  0x28   : > { %1182 = vset.pattern.permute.xlu0 %v1410_v0  ;;  %1183 = vset.pattern.permute.xlu2 %v1410_v0  ;;  %v314_v4 = vpack.c.bf16 %v1551_v1, %v1551_v1  ;;  %v311_v7 = vld [vmem:[%s1893_s2] sm:$0x3f]  ;;  %vm426_vm2 = vcmask 1040384   ;;  %vm401_vm3 = vcmask 15360   ;;  %s301_s29 = scalar_lea.vmem [#allocation5], %s1073_s7  ;;  %s1330_s7 = scalar_lea.hbm %s1897_s6, 32 }
  0x29   : > { %s303_s21 = scalar_select %p302_p3, %s1396_s25, 1  ;;  %v312_v8 = vld [vmem:[%s1894_s3] sm:$0x3f]  ;;  %v313_v9 = vpack.c.bf16 %v311_v7, %v311_v7 }
  0x2a   : > { %317 = vperm.xlu0 %1182, %v312_v8   ;;  %v326_v10 = vsel %vm324_vm0, %v314_v4, 0  ;;  %s965_s30 = sshll.u32 %s301_s29, 4  ;;  %s966_s30 = int_to_ptr.vmem [resolvable:$true] %s965_s30 }
  0x2b   : > { %s1102_s11 = sshll.u32 %s303_s21, 4  ;;  %335 = vmatpush.bf16.msra.mxu0 %v326_v10  ;;  %v344_v13 = vrot.slane %v313_v9, 1  ;;  %s1098_s21 = sshll.u32 %s1396_s25, 1 }
  0x2c   : > { %s306_s20 = scalar_lea.vmem %s1892_s1, %s1102_s11  ;;  %s961_s11 = sadd.s32 %s1392_s24, %s1098_s21 }
  0x2d   : > { %v310_v2 = vld [vmem:[%s306_s20 + $0x8] sm:$0xff]  ;;  %v309_v3 = vld [vmem:[%s306_s20] sm:$0xff]  ;;  %s1099_s16 = sshll.u32 %s961_s11, 3  ;;  %s951_s25 = scalar_lea.sflag [#allocation4], %s1536_s9 }
  0x2e   : > { %v342_v5 = vpack.c.bf16 %v310_v2, %v310_v2  ;;  %v341_v6 = vpack.c.bf16 %v309_v3, %v309_v3  ;;  %1077 = vmatmul.msk.bf16.vlgmr.msra.gmra.mxu0 %vm320_vm1, %v313_v9  ;;  %s963_s12 = scalar_lea.hbm %s1897_s6, %s1099_s16 }
  0x2f   : > { %s967_s10 = sshll.u32 %s963_s12, 4  ;;  %s968_s10 = int_to_ptr.hbm [resolvable:$true] %s967_s10 }
  0x30   : > { %v354_v11 = vsel %vm324_vm0, %v342_v5, 0  ;;  %v351_v12 = vsel %vm324_vm0, %v341_v6, 0  ;;  %s1324_s24 = sshra.s32 %s968_s10, 4  ;;  %s1325_s24 = int_to_ptr.hbm [resolvable:$true] %s1324_s24 }
  0x31   : > { %376 = vmatpush.bf16.msra.mxu2 %v354_v11  ;;  %363 = vmatpush.bf16.msra.mxu1 %v351_v12  ;;  %s1326_s14 = scalar_lea.hbm %s1325_s24, 8  ;;  %p1331_p8 = scmp.lt.s32.totalorder %s1325_s24, %s1897_s6 }
  0x32   : > { %p1327_p5 = scmp.ne.s32.totalorder %s1325_s24, %s1326_s14  ;;  %p1332_p10 = scmp.lt.s32.totalorder %s1330_s7, %s1326_s14 }
  0x34   : > { %1079 = vmatmul.msk.bf16.vlgmr.msra.gmra.mxu2 %vm320_vm1, %v344_v13  ;;  %1078 = vmatmul.msk.bf16.vlgmr.msra.gmra.mxu1 %vm320_vm1, %v344_v13  ;;  %p1328_p6 = pnand %p1327_p5, %p1511_p9  ;;  %p1333_p11 = por %p1332_p10, %p1331_p8 }
  0x36   : > { %p1329_p7 = pneg %p1328_p6 }
  0x38   : > { %p1334_p13 = pnand %p1333_p11, %p1329_p7 }
  0x9c   : > { %v318_v14 = vpop.permute.xlu0 %317 }
  0x9d   : > { %v345_v15 = vrot.slane %v318_v14, 2 }
  0xab   : > { %v337_v16 = vpop.f32.mrf.mxu0 }
  0xac   : > { %v338_v17 = vadd.f32 %v337_v16, %v318_v14 }
  0xae   : > { %v382_v20 = vpack.c.bf16 %v338_v17, %v338_v17 }
  0xb0   : > { %385 = vxpose.xlu0.c.b16.start.end [1/1] (short) %v382_v20, 128 }
  0xb1   : > { %v365_v18 = vpop.f32.mrf.mxu1 }
  0xb2   : > { %v366_v19 = vadd.f32 %v365_v18, %v345_v15 }
  0xb3   : > { %v339_v26 = vpop.f32.mrf.mxu0 }
  0xb4   : > { %v383_v21 = vpack.c.bf16 %v366_v19, %v366_v19 }
  0xb6   : > { %v428_v23 = vsel %vm426_vm2, %v383_v21, 0  ;;  %v789_v24 = vrot.slane %v383_v21, 1 }
  0xb7   : > { %v378_v22 = vpop.f32.mrf.mxu2  ;;  %440 = vmatpush.bf16.msra.mxu3 %v428_v23 }
  0xb8   : > { %v379_v25 = vadd.f32 %v378_v22, %v345_v15  ;;  %800 = vmatpush.bf16.xpose.msrb.mxu1 %v789_v24 }
  0xb9   : > { %v367_v28 = vpop.f32.mrf.mxu1 }
  0xba   : > { %v384_v27 = vpack.c.bf16 %v379_v25, %v379_v25 }
  0xbc   : > { %v431_v29 = vsel %vm426_vm2, %v384_v27, 0  ;;  %v790_v30 = vrot.slane %v384_v27, 1 }
  0xbd   : > { %489 = vmatpush.bf16.msrb.mxu0 %v431_v29 }
  0xbe   : > { %849 = vmatpush.bf16.xpose.msrb.mxu2 %v790_v30 }
  0xbf   : > { %v380_v31 = vpop.f32.mrf.mxu2 }
 0x15c   : > { %v393_v32 = vpop.trf.xlu0 }
 0x15d   : > { %1080 = vmatmul.msk.bf16.vlgmr.msra.gmra.mxu3 %vm401_vm3, %v393_v32  ;;  %1088 = vmatmul.msk.bf16.vlgmr.msrb.gmra.mxu0 %vm401_vm3, %v393_v32 }
 0x16c   : > { %v394_v33 = vpop.trf.xlu0 }
 0x16d   : > { %1081 = vmatmul.msk.bf16.gmra.mxu3 %vm401_vm3, %v394_v33  ;;  %1089 = vmatmul.msk.bf16.gmra.mxu0 %vm401_vm3, %v394_v33 }
 0x17c   : > { %v395_v34 = vpop.trf.xlu0 }
 0x17d   : > { %1082 = vmatmul.msk.bf16.gmra.mxu3 %vm401_vm3, %v395_v34  ;;  %1090 = vmatmul.msk.bf16.gmra.mxu0 %vm401_vm3, %v395_v34 }
 0x18c   : > { %v396_v35 = vpop.trf.xlu0 }
 0x18d   : > { %1083 = vmatmul.msk.bf16.gmra.mxu3 %vm401_vm3, %v396_v35  ;;  %1091 = vmatmul.msk.bf16.gmra.mxu0 %vm401_vm3, %v396_v35 }
 0x19c   : > { %v397_v36 = vpop.trf.xlu0 }
 0x19d   : > { %1084 = vmatmul.msk.bf16.gmra.mxu3 %vm401_vm3, %v397_v36  ;;  %1092 = vmatmul.msk.bf16.gmra.mxu0 %vm401_vm3, %v397_v36 }
 0x1ac   : > { %v398_v37 = vpop.trf.xlu0 }
 0x1ad   : > { %1085 = vmatmul.msk.bf16.gmra.mxu3 %vm401_vm3, %v398_v37  ;;  %1093 = vmatmul.msk.bf16.gmra.mxu0 %vm401_vm3, %v398_v37 }
 0x1bc   : > { %v399_v38 = vpop.trf.xlu0 }
 0x1bd   : > { %1086 = vmatmul.msk.bf16.gmra.mxu3 %vm401_vm3, %v399_v38  ;;  %1094 = vmatmul.msk.bf16.gmra.mxu0 %vm401_vm3, %v399_v38 }
 0x1cc   : > { %v400_v43 = vpop.trf.xlu0 }
 0x1cd   : > { %1087 = vmatmul.msk.bf16.gmra.mxu3 %vm401_vm3, %v400_v43  ;;  %1095 = vmatmul.msk.bf16.gmra.mxu0 %vm401_vm3, %v400_v43 }
 0x1da   : > { %v491_v39 = vpop.f32.mrf.mxu0 }
 0x1e0   : > { %v442_v40 = vpop.f32.mrf.mxu3 }
 0x1e1   : > { %v531_v41 = vmax.f32 %v442_v40, %v491_v39 }
 0x1e2   : > { %v493_v42 = vpop.f32.mrf.mxu0 }
 0x1e3   : > { %532 = vmax.xlane.f32.xlu1 %v531_v41 }
 0x1e8   : > { %v444_v44 = vpop.f32.mrf.mxu3 }
 0x1e9   : > { %v534_v45 = vmax.f32 %v444_v44, %v493_v42 }
 0x1ea   : > { %v496_v46 = vpop.f32.mrf.mxu0 }
 0x1eb   : > { %535 = vmax.xlane.f32.xlu1 %v534_v45 }
 0x1f0   : > { %v447_v47 = vpop.f32.mrf.mxu3 }
 0x1f1   : > { %v537_v48 = vmax.f32 %v447_v47, %v496_v46 }
 0x1f2   : > { %v1577_v49 = vpop.f32.mrf.mxu0 }
 0x1f3   : > { %538 = vmax.xlane.f32.xlu2 %v537_v48 }
 0x1f8   : > { %v449_v50 = vpop.f32.mrf.mxu3 }
 0x1f9   : > { %v540_v51 = vmax.f32 %v449_v50, %v1577_v49 }
 0x1fa   : > { %v1580_v52 = vpop.f32.mrf.mxu0 }
 0x1fb   : > { %541 = vmax.xlane.f32.xlu2 %v540_v51 }
 0x200   : > { %v1582_v53 = vpop.f32.mrf.mxu3 }
 0x201   : > { %v543_v54 = vmax.f32 %v1582_v53, %v1580_v52 }
 0x202   : > { %v1586_v55 = vpop.f32.mrf.mxu0 }
 0x203   : > { %544 = vmax.xlane.f32.xlu1 %v543_v54 }
 0x208   : > { %v1588_v56 = vpop.f32.mrf.mxu3 }
 0x209   : > { %v546_v57 = vmax.f32 %v1588_v56, %v1586_v55 }
 0x20a   : > { %v1592_v58 = vpop.f32.mrf.mxu0 }
 0x20b   : > { %547 = vmax.xlane.f32.xlu2 %v546_v57 }
 0x210   : > { %v1594_v59 = vpop.f32.mrf.mxu3 }
 0x211   : > { %v549_v60 = vmax.f32 %v1594_v59, %v1592_v58 }
 0x212   : > { %v1598_v61 = vpop.f32.mrf.mxu0 }
 0x213   : > { %550 = vmax.xlane.f32.xlu1 %v549_v60 }
 0x218   : > { %v1600_v62 = vpop.f32.mrf.mxu3 }
 0x219   : > { %v552_v63 = vmax.f32 %v1600_v62, %v1598_v61 }
 0x21a   : > { %v1606_v7 = vpop.f32.mrf.mxu0 }
 0x21b   : > { %553 = vmax.xlane.f32.xlu2 %v552_v63 }
 0x220   : > { %v1604_v6 = vpop.f32.mrf.mxu3 }
 0x221   : > { %v555_v26 = vmax.f32 %v1604_v6, %v1606_v7 }
 0x222   : > { %v1616_v17 = vpop.f32.mrf.mxu0 }
 0x228   : > { %v1612_v15 = vpop.f32.mrf.mxu3 }
 0x229   : > { %v558_v37 = vmax.f32 %v1612_v15, %v1616_v17 }
 0x22a   : > { %v1628_v28 = vpop.f32.mrf.mxu0 }
 0x230   : > { %v1626_v27 = vpop.f32.mrf.mxu3 }
 0x231   : > { %v561_v48 = vmax.f32 %v1626_v27, %v1628_v28 }
 0x238   : > { %v1641_v41 = vpop.f32.mrf.mxu3 }
 0x240   : > { %v1659_v60 = vpop.f32.mrf.mxu3 }
 0x256   : > { %v533_v0 = vpop.xlane.xlu1 %532 }
 0x257   : > { %v579_v2 = vsub.f32 %v442_v40, %v533_v0  ;;  %v580_v3 = vsub.f32 %v491_v39, %v533_v0 }
 0x259   : > { %v611_v4 = vmul.f32 1.442695, %v579_v2  ;;  %v613_v5 = vmul.f32 1.442695, %v580_v3 }
 0x25b   : > { %1184 = vpow2.f32 %v611_v4 }
 0x25c   : > { %1186 = vpow2.f32 %v613_v5 }
 0x25e   : > { %v536_v8 = vpop.xlane.xlu1 %535 }
 0x25f   : > { %v581_v9 = vsub.f32 %v444_v44, %v536_v8  ;;  %v582_v10 = vsub.f32 %v493_v42, %v536_v8  ;;  %v1643_v42 = vpop.f32.mrf.mxu0 }
 0x260   : > { %v564_v2 = vmax.f32 %v1641_v41, %v1643_v42 }
 0x261   : > { %v1608_v11 = vpop.eup %1184  ;;  %v615_v12 = vmul.f32 1.442695, %v581_v9  ;;  %v617_v13 = vmul.f32 1.442695, %v582_v10 }
 0x262   : > { %v1610_v14 = vpop.eup %1186 }
 0x263   : > { %1188 = vpow2.f32 %v615_v12  ;;  %v675_v16 = vadd.f32 %v1610_v14, %v1608_v11 }
 0x264   : > { %1190 = vpow2.f32 %v617_v13  ;;  %v1677_v13 = vpop.f32.mrf.mxu3 }
 0x265   : > { %676 = vadd.xlane.f32.xlu1 %v675_v16 }
 0x266   : > { %v539_v18 = vpop.xlane.xlu2 %538 }
 0x267   : > { %v583_v19 = vsub.f32 %v447_v47, %v539_v18  ;;  %v584_v20 = vsub.f32 %v496_v46, %v539_v18  ;;  %v1661_v63 = vpop.f32.mrf.mxu0 }
 0x268   : > { %v567_v12 = vmax.f32 %v1659_v60, %v1661_v63 }
 0x269   : > { %v1618_v21 = vpop.eup %1188  ;;  %v619_v22 = vmul.f32 1.442695, %v583_v19  ;;  %v621_v23 = vmul.f32 1.442695, %v584_v20 }
 0x26a   : > { %v1620_v24 = vpop.eup %1190 }
 0x26b   : > { %1192 = vpow2.f32 %v619_v22  ;;  %v678_v25 = vadd.f32 %v1620_v24, %v1618_v21 }
 0x26c   : > { %1194 = vpow2.f32 %v621_v23 }
 0x26d   : > { %679 = vadd.xlane.f32.xlu2 %v678_v25  ;;  %556 = vmax.xlane.f32.xlu1 %v555_v26 }
 0x26e   : > { %v542_v29 = vpop.xlane.xlu2 %541 }
 0x26f   : > { %v585_v30 = vsub.f32 %v449_v50, %v542_v29  ;;  %v586_v31 = vsub.f32 %v1577_v49, %v542_v29  ;;  %v1679_v16 = vpop.f32.mrf.mxu0  ;;  %v1691_v29 = vpop.f32.mrf.mxu3 }
 0x270   : > { %v570_v26 = vmax.f32 %v1677_v13, %v1679_v16 }
 0x271   : > { %v1631_v32 = vpop.eup %1192  ;;  %v623_v33 = vmul.f32 1.442695, %v585_v30  ;;  %v625_v34 = vmul.f32 1.442695, %v586_v31 }
 0x272   : > { %v1633_v35 = vpop.eup %1194 }
 0x273   : > { %1196 = vpow2.f32 %v623_v33  ;;  %v681_v36 = vadd.f32 %v1633_v35, %v1631_v32 }
 0x274   : > { %1198 = vpow2.f32 %v625_v34 }
 0x275   : > { %682 = vadd.xlane.f32.xlu0 %v681_v36  ;;  %559 = vmax.xlane.f32.xlu2 %v558_v37 }
 0x276   : > { %v545_v38 = vpop.xlane.xlu1 %544 }
 0x277   : > { %v587_v39 = vsub.f32 %v1582_v53, %v545_v38  ;;  %v588_v40 = vsub.f32 %v1580_v52, %v545_v38  ;;  %v1703_v34 = vpop.f32.mrf.mxu3 }
 0x279   : > { %v1645_v43 = vpop.eup %1196  ;;  %v627_v44 = vmul.f32 1.442695, %v587_v39  ;;  %v629_v45 = vmul.f32 1.442695, %v588_v40 }
 0x27a   : > { %v1647_v46 = vpop.eup %1198 }
 0x27b   : > { %1200 = vpow2.f32 %v627_v44  ;;  %v684_v47 = vadd.f32 %v1647_v46, %v1645_v43 }
 0x27c   : > { %1202 = vpow2.f32 %v629_v45 }
 0x27d   : > { %685 = vadd.xlane.f32.xlu1 %v684_v47  ;;  %562 = vmax.xlane.f32.xlu2 %v561_v48 }
 0x27e   : > { %v548_v49 = vpop.xlane.xlu2 %547 }
 0x27f   : > { %v589_v50 = vsub.f32 %v1588_v56, %v548_v49  ;;  %v590_v51 = vsub.f32 %v1586_v55, %v548_v49 }
 0x281   : > { %v1655_v52 = vpop.eup %1200  ;;  %v631_v53 = vmul.f32 1.442695, %v589_v50  ;;  %v633_v54 = vmul.f32 1.442695, %v590_v51 }
 0x282   : > { %v1657_v57 = vpop.eup %1202 }
 0x283   : > { %1204 = vpow2.f32 %v631_v53  ;;  %v687_v0 = vadd.f32 %v1657_v57, %v1655_v52 }
 0x284   : > { %1206 = vpow2.f32 %v633_v54 }
 0x285   : > { %688 = vadd.xlane.f32.xlu2 %v687_v0  ;;  %565 = vmax.xlane.f32.xlu1 %v564_v2 }
 0x286   : > { %v551_v55 = vpop.xlane.xlu1 %550 }
 0x287   : > { %v591_v56 = vsub.f32 %v1594_v59, %v551_v55  ;;  %v592_v3 = vsub.f32 %v1592_v58, %v551_v55 }
 0x289   : > { %v1669_v4 = vpop.eup %1204  ;;  %v635_v5 = vmul.f32 1.442695, %v591_v56  ;;  %v637_v8 = vmul.f32 1.442695, %v592_v3 }
 0x28a   : > { %v1671_v9 = vpop.eup %1206 }
 0x28b   : > { %1208 = vpow2.f32 %v635_v5  ;;  %v690_v10 = vadd.f32 %v1671_v9, %v1669_v4 }
 0x28c   : > { %1210 = vpow2.f32 %v637_v8 }
 0x28d   : > { %691 = vadd.xlane.f32.xlu1 %v690_v10  ;;  %568 = vmax.xlane.f32.xlu2 %v567_v12 }
 0x28e   : > { %v554_v58 = vpop.xlane.xlu2 %553 }
 0x28f   : > { %v593_v59 = vsub.f32 %v1600_v62, %v554_v58  ;;  %v594_v18 = vsub.f32 %v1598_v61, %v554_v58  ;;  %v1693_v62 = vpop.f32.mrf.mxu0 }
 0x290   : > { %v573_v33 = vmax.f32 %v1691_v29, %v1693_v62 }
 0x291   : > { %v1683_v19 = vpop.eup %1208  ;;  %v639_v20 = vmul.f32 1.442695, %v593_v59  ;;  %v641_v22 = vmul.f32 1.442695, %v594_v18 }
 0x292   : > { %v1685_v23 = vpop.eup %1210 }
 0x293   : > { %1212 = vpow2.f32 %v639_v20  ;;  %v693_v25 = vadd.f32 %v1685_v23, %v1683_v19 }
 0x294   : > { %1214 = vpow2.f32 %v641_v22 }
 0x295   : > { %694 = vadd.xlane.f32.xlu2 %v693_v25  ;;  %571 = vmax.xlane.f32.xlu1 %v570_v26 }
 0x297   : > { %v1705_v36 = vpop.f32.mrf.mxu0 }
 0x298   : > { %v576_v37 = vmax.f32 %v1703_v34, %v1705_v36 }
 0x299   : > { %v1695_v61 = vpop.eup %1212 }
 0x29a   : > { %v1697_v30 = vpop.eup %1214 }
 0x29b   : > { %v696_v31 = vadd.f32 %v1697_v30, %v1695_v61 }
 0x29d   : > { %697 = vadd.xlane.f32.xlu1 %v696_v31  ;;  %574 = vmax.xlane.f32.xlu2 %v573_v33 }
 0x2a5   : > { %577 = vmax.xlane.f32.xlu1 %v576_v37 }
 0x2d8   : > { %v677_v38 = vpop.xlane.xlu1 %676 }
 0x2d9   : > { %1216 = vrcp.f32 %v677_v38 }
 0x2df   : > { %v1217_v49 = vpop.eup %1216 }
 0x2e0   : > { %v680_v39 = vpop.xlane.xlu2 %679  ;;  %v557_v40 = vpop.xlane.xlu1 %556  ;;  %v739_v53 = vmul.f32 %v1217_v49, %v1608_v11  ;;  %v740_v0 = vmul.f32 %v1217_v49, %v1610_v14 }
 0x2e1   : > { %1218 = vrcp.f32 %v680_v39  ;;  %v595_v44 = vsub.f32 %v1604_v6, %v557_v40  ;;  %v596_v45 = vsub.f32 %v1606_v7, %v557_v40 }
 0x2e3   : > { %v643_v47 = vmul.f32 1.442695, %v595_v44  ;;  %v645_v48 = vmul.f32 1.442695, %v596_v45 }
 0x2e5   : > { %1220 = vpow2.f32 %v643_v47 }
 0x2e6   : > { %1222 = vpow2.f32 %v645_v48 }
 0x2e7   : > { %v1219_v50 = vpop.eup %1218 }
 0x2e8   : > { %v560_v51 = vpop.xlane.xlu2 %559  ;;  %v741_v54 = vmul.f32 %v1219_v50, %v1618_v21  ;;  %v742_v2 = vmul.f32 %v1219_v50, %v1620_v24  ;;  %v683_v12 = vpop.xlane.xlu0 %682 }
 0x2e9   : > { %v597_v55 = vsub.f32 %v1612_v15, %v560_v51  ;;  %v598_v6 = vsub.f32 %v1616_v17, %v560_v51 }
 0x2ea   : > { %v771_v7 = vpack.c.bf16 %v741_v54, %v739_v53  ;;  %v772_v56 = vpack.c.bf16 %v742_v2, %v740_v0 }
 0x2eb   : > { %v1717_v3 = vpop.eup %1220  ;;  %v647_v5 = vmul.f32 1.442695, %v597_v55  ;;  %v649_v8 = vmul.f32 1.442695, %v598_v6 }
 0x2ec   : > { %v1719_v10 = vpop.eup %1222  ;;  %801 = vmatmul.bf16.vlgmr.msrb.gmra.mxu1 %v771_v7  ;;  %850 = vmatmul.bf16.vlgmr.msrb.gmra.mxu2 %v772_v56 }
 0x2ed   : > { %1224 = vpow2.f32 %v647_v5  ;;  %v699_v11 = vadd.f32 %v1719_v10, %v1717_v3 }
 0x2ee   : > { %1226 = vpow2.f32 %v649_v8 }
 0x2ef   : > { %1228 = vrcp.f32 %v683_v12  ;;  %700 = vadd.xlane.f32.xlu2 %v699_v11 }
 0x2f0   : > { %v686_v14 = vpop.xlane.xlu1 %685  ;;  %v563_v15 = vpop.xlane.xlu2 %562 }
 0x2f1   : > { %1230 = vrcp.f32 %v686_v14  ;;  %v599_v17 = vsub.f32 %v1626_v27, %v563_v15  ;;  %v600_v21 = vsub.f32 %v1628_v28, %v563_v15 }
 0x2f3   : > { %v1725_v24 = vpop.eup %1224  ;;  %v651_v58 = vmul.f32 1.442695, %v599_v17  ;;  %v653_v59 = vmul.f32 1.442695, %v600_v21 }
 0x2f4   : > { %v1727_v18 = vpop.eup %1226 }
 0x2f5   : > { %v1229_v20 = vpop.eup %1228  ;;  %1232 = vpow2.f32 %v651_v58  ;;  %v702_v22 = vadd.f32 %v1727_v18, %v1725_v24 }
 0x2f6   : > { %1234 = vpow2.f32 %v653_v59  ;;  %v743_v27 = vmul.f32 %v1229_v20, %v1631_v32  ;;  %v744_v33 = vmul.f32 %v1229_v20, %v1633_v35 }
 0x2f7   : > { %v1231_v25 = vpop.eup %1230  ;;  %703 = vadd.xlane.f32.xlu1 %v702_v22 }
 0x2f8   : > { %v689_v26 = vpop.xlane.xlu2 %688  ;;  %v566_v31 = vpop.xlane.xlu1 %565  ;;  %v745_v28 = vmul.f32 %v1231_v25, %v1645_v43  ;;  %v746_v37 = vmul.f32 %v1231_v25, %v1647_v46 }
 0x2f9   : > { %v601_v38 = vsub.f32 %v1641_v41, %v566_v31  ;;  %v602_v39 = vsub.f32 %v1643_v42, %v566_v31 }
 0x2fa   : > { %v773_v40 = vpack.c.bf16 %v745_v28, %v743_v27  ;;  %v774_v44 = vpack.c.bf16 %v746_v37, %v744_v33 }
 0x2fb   : > { %v1737_v45 = vpop.eup %1232  ;;  %v655_v47 = vmul.f32 1.442695, %v601_v38  ;;  %v657_v48 = vmul.f32 1.442695, %v602_v39 }
 0x2fc   : > { %v1739_v49 = vpop.eup %1234  ;;  %806 = vmatmul.bf16.gmra.mxu1 %v773_v40  ;;  %855 = vmatmul.bf16.gmra.mxu2 %v774_v44 }
 0x2fd   : > { %1236 = vpow2.f32 %v655_v47  ;;  %v705_v32 = vadd.f32 %v1739_v49, %v1737_v45 }
 0x2fe   : > { %1238 = vpow2.f32 %v657_v48 }
 0x2ff   : > { %1240 = vrcp.f32 %v689_v26  ;;  %706 = vadd.xlane.f32.xlu2 %v705_v32 }
 0x300   : > { %v692_v35 = vpop.xlane.xlu1 %691  ;;  %v569_v41 = vpop.xlane.xlu2 %568 }
 0x301   : > { %1242 = vrcp.f32 %v692_v35  ;;  %v603_v42 = vsub.f32 %v1659_v60, %v569_v41  ;;  %v604_v43 = vsub.f32 %v1661_v63, %v569_v41 }
 0x303   : > { %v1745_v46 = vpop.eup %1236  ;;  %v659_v50 = vmul.f32 1.442695, %v603_v42  ;;  %v661_v51 = vmul.f32 1.442695, %v604_v43 }
 0x304   : > { %v1747_v53 = vpop.eup %1238 }
 0x305   : > { %v1241_v54 = vpop.eup %1240  ;;  %1244 = vpow2.f32 %v659_v50  ;;  %v708_v0 = vadd.f32 %v1747_v53, %v1745_v46 }
 0x306   : > { %1246 = vpow2.f32 %v661_v51  ;;  %v747_v60 = vmul.f32 %v1241_v54, %v1655_v52  ;;  %v748_v7 = vmul.f32 %v1241_v54, %v1657_v57 }
 0x307   : > { %v1243_v2 = vpop.eup %1242  ;;  %709 = vadd.xlane.f32.xlu1 %v708_v0 }
 0x308   : > { %v695_v55 = vpop.xlane.xlu2 %694  ;;  %v572_v6 = vpop.xlane.xlu1 %571  ;;  %v749_v63 = vmul.f32 %v1243_v2, %v1669_v4  ;;  %v750_v56 = vmul.f32 %v1243_v2, %v1671_v9 }
 0x309   : > { %v605_v5 = vsub.f32 %v1677_v13, %v572_v6  ;;  %v606_v8 = vsub.f32 %v1679_v16, %v572_v6 }
 0x30a   : > { %v775_v12 = vpack.c.bf16 %v749_v63, %v747_v60  ;;  %v776_v11 = vpack.c.bf16 %v750_v56, %v748_v7 }
 0x30b   : > { %v1757_v14 = vpop.eup %1244  ;;  %v663_v15 = vmul.f32 1.442695, %v605_v5  ;;  %v665_v17 = vmul.f32 1.442695, %v606_v8 }
 0x30c   : > { %v1759_v21 = vpop.eup %1246  ;;  %811 = vmatmul.bf16.gmra.mxu1 %v775_v12  ;;  %860 = vmatmul.bf16.gmra.mxu2 %v776_v11 }
 0x30d   : > { %1248 = vpow2.f32 %v663_v15  ;;  %v711_v52 = vadd.f32 %v1759_v21, %v1757_v14 }
 0x30e   : > { %1250 = vpow2.f32 %v665_v17 }
 0x30f   : > { %1252 = vrcp.f32 %v695_v55  ;;  %712 = vadd.xlane.f32.xlu2 %v711_v52 }
 0x310   : > { %v698_v57 = vpop.xlane.xlu1 %697  ;;  %v575_v4 = vpop.xlane.xlu2 %574 }
 0x311   : > { %1254 = vrcp.f32 %v698_v57  ;;  %v607_v9 = vsub.f32 %v1691_v29, %v575_v4  ;;  %v608_v13 = vsub.f32 %v1693_v62, %v575_v4 }
 0x313   : > { %v1765_v16 = vpop.eup %1248  ;;  %v667_v58 = vmul.f32 1.442695, %v607_v9  ;;  %v669_v59 = vmul.f32 1.442695, %v608_v13 }
 0x314   : > { %v1767_v20 = vpop.eup %1250 }
 0x315   : > { %v1253_v22 = vpop.eup %1252  ;;  %1256 = vpow2.f32 %v667_v58  ;;  %v714_v25 = vadd.f32 %v1767_v20, %v1765_v16 }
 0x316   : > { %1258 = vpow2.f32 %v669_v59  ;;  %v751_v27 = vmul.f32 %v1253_v22, %v1683_v19  ;;  %v752_v62 = vmul.f32 %v1253_v22, %v1685_v23 }
 0x317   : > { %v1255_v26 = vpop.eup %1254  ;;  %715 = vadd.xlane.f32.xlu1 %v714_v25 }
 0x318   : > { %v578_v31 = vpop.xlane.xlu1 %577  ;;  %v753_v29 = vmul.f32 %v1255_v26, %v1695_v61  ;;  %v754_v28 = vmul.f32 %v1255_v26, %v1697_v30 }
 0x319   : > { %v609_v33 = vsub.f32 %v1703_v34, %v578_v31  ;;  %v610_v37 = vsub.f32 %v1705_v36, %v578_v31 }
 0x31a   : > { %v777_v38 = vpack.c.bf16 %v753_v29, %v751_v27  ;;  %v778_v39 = vpack.c.bf16 %v754_v28, %v752_v62 }
 0x31b   : > { %v1777_v40 = vpop.eup %1256  ;;  %v671_v44 = vmul.f32 1.442695, %v609_v33  ;;  %v673_v47 = vmul.f32 1.442695, %v610_v37 }
 0x31c   : > { %v1779_v48 = vpop.eup %1258  ;;  %816 = vmatmul.bf16.gmra.mxu1 %v777_v38  ;;  %865 = vmatmul.bf16.gmra.mxu2 %v778_v39 }
 0x31d   : > { %1260 = vpow2.f32 %v671_v44  ;;  %v717_v19 = vadd.f32 %v1779_v48, %v1777_v40 }
 0x31e   : > { %1262 = vpow2.f32 %v673_v47 }
 0x31f   : > { %718 = vadd.xlane.f32.xlu2 %v717_v19 }
 0x323   : > { %v1783_v23 = vpop.eup %1260 }
 0x324   : > { %v1785_v61 = vpop.eup %1262 }
 0x325   : > { %v720_v30 = vadd.f32 %v1785_v61, %v1783_v23 }
 0x327   : > { %721 = vadd.xlane.f32.xlu1 %v720_v30 }
 0x362   : > { %v701_v34 = vpop.xlane.xlu2 %700 }
 0x363   : > { %1264 = vrcp.f32 %v701_v34 }
 0x369   : > { %v802_v36 = vpop.f32.mrf.mxu1  ;;  %v1265_v35 = vpop.eup %1264 }
 0x36a   : > { %v704_v32 = vpop.xlane.xlu1 %703  ;;  %v755_v51 = vmul.f32 %v1265_v35, %v1717_v3  ;;  %v756_v0 = vmul.f32 %v1265_v35, %v1719_v10 }
 0x36b   : > { %1266 = vrcp.f32 %v704_v32 }
 0x36f   : > { %v851_v41 = vpop.f32.mrf.mxu2 }
 0x370   : > { %v1789_v42 = vadd.f32 %v851_v41, %v802_v36 }
 0x371   : > { %v1267_v43 = vpop.eup %1266  ;;  %v804_v50 = vpop.f32.mrf.mxu1 }
 0x372   : > { %v757_v54 = vmul.f32 %v1267_v43, %v1725_v24  ;;  %v758_v2 = vmul.f32 %v1267_v43, %v1727_v18  ;;  %v707_v60 = vpop.xlane.xlu2 %706 }
 0x373   : > { %1268 = vrcp.f32 %v707_v60 }
 0x374   : > { %v779_v55 = vpack.c.bf16 %v757_v54, %v755_v51  ;;  %v780_v6 = vpack.c.bf16 %v758_v2, %v756_v0 }
 0x376   : > { %821 = vmatmul.bf16.gmra.mxu1 %v779_v55  ;;  %870 = vmatmul.bf16.gmra.mxu2 %v780_v6 }
 0x377   : > { %v853_v63 = vpop.f32.mrf.mxu2 }
 0x378   : > { %v1795_v7 = vadd.f32 %v853_v63, %v804_v50 }
 0x379   : > { %v807_v56 = vpop.f32.mrf.mxu1  ;;  %v1269_v24 = vpop.eup %1268 }
 0x37a   : > { %v710_v5 = vpop.xlane.xlu1 %709  ;;  %v893_v3 = vpack.c.bf16 %v1795_v7, %v1789_v42  ;;  %v759_v11 = vmul.f32 %v1269_v24, %v1737_v45  ;;  %v760_v17 = vmul.f32 %v1269_v24, %v1739_v49 }
 0x37b   : > { %1270 = vrcp.f32 %v710_v5 }
 0x37f   : > { %v856_v8 = vpop.f32.mrf.mxu2 }
 0x380   : > { %v1799_v10 = vadd.f32 %v856_v8, %v807_v56 }
 0x381   : > { %v1271_v18 = vpop.eup %1270  ;;  %v809_v12 = vpop.f32.mrf.mxu1 }
 0x382   : > { %v761_v15 = vmul.f32 %v1271_v18, %v1745_v46  ;;  %v762_v52 = vmul.f32 %v1271_v18, %v1747_v53  ;;  %v713_v9 = vpop.xlane.xlu2 %712 }
 0x383   : > { %1272 = vrcp.f32 %v713_v9 }
 0x384   : > { %v781_v57 = vpack.c.bf16 %v761_v15, %v759_v11  ;;  %v782_v4 = vpack.c.bf16 %v762_v52, %v760_v17 }
 0x386   : > { %826 = vmatmul.bf16.gmra.mxu1 %v781_v57  ;;  %875 = vmatmul.bf16.gmra.mxu2 %v782_v4 }
 0x387   : > { %v858_v13 = vpop.f32.mrf.mxu2 }
 0x388   : > { %v1805_v58 = vadd.f32 %v858_v13, %v809_v12 }
 0x389   : > { %v812_v45 = vpop.f32.mrf.mxu1  ;;  %v1273_v46 = vpop.eup %1272 }
 0x38a   : > { %v716_v59 = vpop.xlane.xlu1 %715  ;;  %v894_v22 = vpack.c.bf16 %v1805_v58, %v1799_v10  ;;  %v763_v26 = vmul.f32 %v1273_v46, %v1757_v14  ;;  %v764_v27 = vmul.f32 %v1273_v46, %v1759_v21 }
 0x38b   : > { %1274 = vrcp.f32 %v716_v59 }
 0x38f   : > { %v861_v25 = vpop.f32.mrf.mxu2 }
 0x390   : > { %v1809_v49 = vadd.f32 %v861_v25, %v812_v45 }
 0x391   : > { %v1275_v53 = vpop.eup %1274  ;;  %v814_v33 = vpop.f32.mrf.mxu1 }
 0x392   : > { %v765_v31 = vmul.f32 %v1275_v53, %v1765_v16  ;;  %v766_v29 = vmul.f32 %v1275_v53, %v1767_v20  ;;  %v719_v37 = vpop.xlane.xlu2 %718 }
 0x393   : > { %1276 = vrcp.f32 %v719_v37  ;;  %v891_v37 = vld [vmem:[%s1895_s4] sm:$0xff] }
 0x394   : > { %v783_v62 = vpack.c.bf16 %v765_v31, %v763_v26  ;;  %v784_v28 = vpack.c.bf16 %v766_v29, %v764_v27  ;;  %v942_v29 = vld [vmem:[%s1896_s5] sm:$0xff] }
 0x395   : > { %945 = vperm.xlu2 %1183, %v942_v29  }
 0x396   : > { %831 = vmatmul.bf16.gmra.mxu1 %v783_v62  ;;  %880 = vmatmul.bf16.gmra.mxu2 %v784_v28  ;;  %v908_v28 = vsel %vm401_vm3, %v894_v22, 0 }
 0x397   : > { %v863_v38 = vpop.f32.mrf.mxu2 }
 0x398   : > { %v1815_v39 = vadd.f32 %v863_v38, %v814_v33  ;;  %v905_v33 = vsel %vm401_vm3, %v893_v3, 0  ;;  %v892_v38 = vpack.c.bf16 %v891_v37, %v891_v37 }
 0x399   : > { %v1277_v16 = vpop.eup %1276  ;;  %v817_v47 = vpop.f32.mrf.mxu1 }
 0x39a   : > { %v722_v44 = vpop.xlane.xlu1 %721  ;;  %v895_v14 = vpack.c.bf16 %v1815_v39, %v1809_v49  ;;  %v767_v30 = vmul.f32 %v1277_v16, %v1777_v40  ;;  %v768_v36 = vmul.f32 %v1277_v16, %v1779_v48 }
 0x39b   : > { %1278 = vrcp.f32 %v722_v44 }
 0x39c   : > { %v911_v62 = vsel %vm401_vm3, %v895_v14, 0 }
 0x39f   : > { %v866_v21 = vpop.f32.mrf.mxu2 }
 0x3a0   : > { %v867_v19 = vadd.f32 %v866_v21, %v817_v47 }
 0x3a1   : > { %v1279_v20 = vpop.eup %1278  ;;  %v819_v43 = vpop.f32.mrf.mxu1 }
 0x3a2   : > { %v769_v34 = vmul.f32 %v1279_v20, %v1783_v23  ;;  %v770_v32 = vmul.f32 %v1279_v20, %v1785_v61 }
 0x3a4   : > { %v785_v35 = vpack.c.bf16 %v769_v34, %v767_v30  ;;  %v786_v41 = vpack.c.bf16 %v770_v32, %v768_v36 }
 0x3a6   : > { %836 = vmatmul.bf16.gmra.mxu1 %v785_v35  ;;  %885 = vmatmul.bf16.gmra.mxu2 %v786_v41 }
 0x3a7   : > { %v868_v50 = vpop.f32.mrf.mxu2 }
 0x3a8   : > { %v869_v53 = vadd.f32 %v868_v50, %v819_v43 }
 0x3aa   : > { %v896_v31 = vpack.c.bf16 %v869_v53, %v867_v19 }
 0x3ac   : > { %v914_v27 = vsel %vm401_vm3, %v896_v31, 0 }
 0x3ef   : > { %v946_v7 = vpop.permute.xlu2 %945 }
 0x3f3   : > { %v822_v51 = vpop.f32.mrf.mxu1 }
 0x3f9   : > { %v871_v54 = vpop.f32.mrf.mxu2 }
 0x3fa   : > { %v872_v0 = vadd.f32 %v871_v54, %v822_v51 }
 0x3fb   : > { %v824_v2 = vpop.f32.mrf.mxu1 }
 0x401   : > { %v873_v55 = vpop.f32.mrf.mxu2 }
 0x402   : > { %v874_v6 = vadd.f32 %v873_v55, %v824_v2 }
 0x403   : > { %v827_v60 = vpop.f32.mrf.mxu1 }
 0x404   : > { %v897_v40 = vpack.c.bf16 %v874_v6, %v872_v0 }
 0x406   : > { %v917_v26 = vsel %vm401_vm3, %v897_v40, 0 }
 0x409   : > { %v876_v63 = vpop.f32.mrf.mxu2 }
 0x40a   : > { %v877_v46 = vadd.f32 %v876_v63, %v827_v60 }
 0x40b   : > { %v829_v23 = vpop.f32.mrf.mxu1 }
 0x411   : > { %v878_v56 = vpop.f32.mrf.mxu2 }
 0x412   : > { %v879_v59 = vadd.f32 %v878_v56, %v829_v23 }
 0x413   : > { %v832_v48 = vpop.f32.mrf.mxu1 }
 0x414   : > { %v898_v25 = vpack.c.bf16 %v879_v59, %v877_v46 }
 0x416   : > { %v920_v49 = vsel %vm401_vm3, %v898_v25, 0 }
 0x419   : > { %v881_v5 = vpop.f32.mrf.mxu2 }
 0x41a   : > { %v882_v9 = vadd.f32 %v881_v5, %v832_v48 }
 0x41b   : > { %v834_v61 = vpop.f32.mrf.mxu1 }
 0x421   : > { %v883_v24 = vpop.f32.mrf.mxu2 }
 0x422   : > { %v884_v57 = vadd.f32 %v883_v24, %v834_v61 }
 0x423   : > { %v837_v8 = vpop.f32.mrf.mxu1 }
 0x424   : > { %v899_v13 = vpack.c.bf16 %v884_v57, %v882_v9 }
 0x426   : > { %v923_v45 = vsel %vm401_vm3, %v899_v13, 0 }
 0x429   : > { %v886_v18 = vpop.f32.mrf.mxu2 }
 0x42a   : > { %v887_v15 = vadd.f32 %v886_v18, %v837_v8 }
 0x42b   : > { %v839_v12 = vpop.f32.mrf.mxu1 }
 0x431   : > { %v888_v11 = vpop.f32.mrf.mxu2 }
 0x432   : > { %v889_v17 = vadd.f32 %v888_v11, %v839_v12 }
 0x434   : > { %v900_v52 = vpack.c.bf16 %v889_v17, %v887_v15 }
 0x436   : > { %v926_v4 = vsel %vm401_vm3, %v900_v52, 0 }
 0x437   : > { %928 = vmatpush.bf16.xpose.msrb.mxu3 %v926_v4 }
 0x43f   : > { %929 = vmatpush.bf16.xpose.msrb.mxu3 %v923_v45 }
 0x447   : > { %930 = vmatpush.bf16.xpose.msrb.mxu3 %v920_v49 }
 0x44f   : > { %931 = vmatpush.bf16.xpose.msrb.mxu3 %v917_v26 }
 0x457   : > { %932 = vmatpush.bf16.xpose.msrb.mxu3 %v914_v27 }
 0x45f   : > { %933 = vmatpush.bf16.xpose.msrb.mxu3 %v911_v62 }
 0x467   : > { %934 = vmatpush.bf16.xpose.msrb.mxu3 %v908_v28 }
 0x46f   : > { %935 = vmatpush.bf16.xpose.msrb.mxu3 %v905_v33 }
 0x476   : > { %1096 = vmatmul.msk.bf16.vlgmr.msrb.gmra.mxu3 %vm401_vm3, %v892_v38 }
 0x4f9   : > { %v937_v42 = vpop.f32.mrf.mxu3 }
 0x4fa   : > { %v941_v3 = vadd.f32 %v937_v42, %v1551_v1 }
 0x4fc   : > { %v948_v10 = vadd.f32 %v946_v7, %v941_v3 }
 0x4fe   : > { %949 = vst [vmem:[%s301_s29] sm:$0xff] %v948_v10 }
 0x4ff   : > { %1337 = shalt.err (!%p1334_p13)
}
 0x500   : > { %1105 = dma.vmem_to_hbm [thread:$0]  (%p1511_p9), %s966_s30, 128, %s968_s10, %s951_s25  }
 0x501   : > { %v939_v1 = vpop.f32.mrf.mxu3 }
 0x502 PF: > { %s1910_s9 = sld [smem:[#allocation8_spill]]  ;;  %p1116_p0 = scmp.ge.s32.totalorder %s1408_s28, 2 }
 0x504   : > { %p1112_p1 = pnand %p1116_p0, %p1517_p12 }
 0x506   : > { %p1113_p2 = pneg %p1112_p1 }
 0x508   : > { %s979_s16 = sand.u32 1, %s1910_s9  }
 0x509   : > { %s980_s17 = scalar_lea.sflag [#allocation4], %s979_s16 }
 0x50a   : > { %1375 = dma.done.wait (%p1113_p2), %s980_s17, 128  }
 0x50b   : > { %1377 = vsyncadd (%p1113_p2), %s980_s17, 4294967168  ;;  %s22_s28 = sadd.s32 1, %s1408_s28   ;;  %s1912_s13 = sld [smem:[#allocation9_spill]] }
 0x50c   : > { %p19_p4 = scmp.ge.s32.totalorder %s22_s28, 6   ;;  %s1913_s20 = sld [smem:[#allocation10_spill]] }
 0x50d   : > { %s1914_s21 = smov %s1384_s22  ;;  %s1915_s22 = smov %s1388_s23 }
 0x50e   : > { %s1916_s23 = smov %s1524_s18  ;;  %s1917_s24 = smov %s1400_s26 }
 0x50f   : > { %s1918_s25 = smov %s1404_s27  ;;  %21 = sbr.rel (!%p19_p4) target bundleno = 7 (0x7), region = 92 }
 0x511   : > { %s1919_s26 = smov %s1912_s13 }
 0x512   : > { %s1920_s27 = smov %s1913_s20 }
 0x514   :  { %986 = vsyncpa [#allocation3], 1 }
 0x515   :  { %988 = vsyncpa [#allocation3 + $0x1], 1 }
 0x516   :  { %989 = vsyncpa [#allocation4], 1 }
 0x517   :  { %991 = vsyncpa [#allocation4 + $0x1], 1 }

</bundles_post_ra>
